<compile_context>
chip_gen: v7x
topology: tpu7x:2x2x1
jax: 0.10.0
libtpu: 0.0.40
codegen_flags: <defaults>
</compile_context>

<pallas_src>
import math
import functools

import jax
import jax.numpy as jnp
from jax.experimental import pallas as pl
from jax.experimental.pallas import tpu as pltpu


def _cross_fusion_kernel(x_ref, y_ref, wqkv_ref, bqkv_ref, wp_ref, bp_ref,
                         o_ref, ctx_ref, *, batch, num_heads):
    """Single grid step over the whole (tiny) problem.

    x_ref, y_ref : (B*N, C)   flattened token rows (reshape done in wrapper)
    wqkv_ref     : (C, 3C)    [wq*scale | wk | wv]  (Linear weights as (in, out))
    bqkv_ref     : (1, 3C)    [bq*scale | bk | bv]
    wp_ref       : (C, C)     output projection
    bp_ref       : (1, C)
    o_ref        : (B*N, C)
    ctx_ref      : (B*N, C)   f32 VMEM scratch used to merge head outputs
    """
    BN, C = x_ref.shape
    B = batch
    N = BN // B
    nh = num_heads
    hd = C // nh
    bf16 = jnp.bfloat16

    # ---- fused q|k|v projection: one bf16 MXU issue over stacked [x; y] rows.
    # Row-concat along the sublane dim at an 8-aligned offset is free.
    xy = jnp.concatenate([x_ref[...], y_ref[...]], axis=0).astype(bf16)  # (2BN, C)
    qkv = jnp.dot(xy, wqkv_ref[...].astype(bf16),
                  preferred_element_type=jnp.float32) + bqkv_ref[...]    # (2BN, 3C) f32

    # ---- head-batched q/k/v: (nh*B, N, hd) with batch index g = h*B + b.
    # Only lane slices, leading-dim reshapes and axis-0 concats (no 4-D
    # transposes), all of which lower cleanly in Mosaic.
    def split_heads(row0, col0):
        return jnp.concatenate(
            [qkv[row0:row0 + BN, col0 + h * hd:col0 + (h + 1) * hd]
             .reshape(B, N, hd) for h in range(nh)],
            axis=0)

    q = split_heads(0, 0).astype(bf16)        # attention scale pre-folded in
    k = split_heads(BN, C).astype(bf16)
    v = split_heads(BN, 2 * C).astype(bf16)

    # ---- one batched QK^T over all (batch, head) pairs; no explicit k^T.
    s = jnp.einsum('gqd,gkd->gqk', q, k,
                   preferred_element_type=jnp.float32)        # (nh*B, N, N) f32

    # ---- numerically-stable softmax, entirely in f32; EUP reciprocal.
    m = jnp.max(s, axis=-1, keepdims=True)
    e = jnp.exp(s - m)
    p = e * pl.reciprocal(jnp.sum(e, axis=-1, keepdims=True), approx=True)
    # attn_drop(p=0.0) is the identity.

    # ---- one batched PV matmul.
    ctx = jnp.einsum('gqk,gkd->gqd', p.astype(bf16), v,
                     preferred_element_type=jnp.float32)      # (nh*B, N, hd)

    # ---- merge heads back to (B*N, C) (head-major columns) via a small VMEM
    # scratch (masked lane stores), then ONE K=C output projection.
    for h in range(nh):
        ctx_ref[:, h * hd:(h + 1) * hd] = ctx[h * B:(h + 1) * B].reshape(BN, hd)

    out = jnp.dot(ctx_ref[...].astype(bf16), wp_ref[...].astype(bf16),
                  preferred_element_type=jnp.float32) + bp_ref[...]
    # proj_drop(p=0.0) is the identity.
    o_ref[...] = out.astype(o_ref.dtype)


def cross_fusion(x, y, params, *, num_heads):
    """x, y: (B, N, C) -> (B, C, H, W) with H = W = sqrt(N)."""
    B, N, C = x.shape
    H = int(math.sqrt(N))
    W = H
    assert H * W == N, "N must be a perfect square"
    assert C % num_heads == 0, "C must be divisible by num_heads"
    hd = C // num_heads
    scale = hd ** (-0.5)

    wq, bq, wkv, bkv, wp, bp = params
    # Fold the attention scale into the q projection and build the fused
    # (C, 3C) projection weight/bias (static/one-shot XLA ops).
    wqkv = jnp.concatenate([wq * scale, wkv], axis=1)   # (C, 3C)
    bqkv = jnp.concatenate([bq * scale, bkv], axis=1)   # (1, 3C)

    # Flatten tokens in the wrapper so the kernel sees plain 2-D blocks.
    x2 = x.reshape(B * N, C)
    y2 = y.reshape(B * N, C)

    kernel = functools.partial(_cross_fusion_kernel, batch=B,
                               num_heads=num_heads)

    out2 = pl.pallas_call(
        kernel,
        out_shape=jax.ShapeDtypeStruct((B * N, C), x.dtype),
        grid_spec=pltpu.PrefetchScalarGridSpec(
            num_scalar_prefetch=0,
            grid=(1,),                                   # whole problem, one step
            in_specs=[
                pl.BlockSpec((B * N, C), lambda i: (0, 0)),     # x rows
                pl.BlockSpec((B * N, C), lambda i: (0, 0)),     # y rows
                pl.BlockSpec((C, 3 * C), lambda i: (0, 0)),     # [wq*scale|wkv]
                pl.BlockSpec((1, 3 * C), lambda i: (0, 0)),     # [bq*scale|bkv]
                pl.BlockSpec((C, C), lambda i: (0, 0)),         # wp
                pl.BlockSpec((1, C), lambda i: (0, 0)),         # bp
            ],
            out_specs=pl.BlockSpec((B * N, C), lambda i: (0, 0)),
            scratch_shapes=[pltpu.VMEM((B * N, C), jnp.float32)],  # head merge
        ),
        compiler_params=pltpu.CompilerParams(
            dimension_semantics=("arbitrary",)),
        # TODO(synk): at non-toy sizes, add a leading "parallel" grid axis over
        # B (v7x second TensorCore) and re-derive block sizes for 64 MiB VMEM.
    )(x2, y2, wqkv, bqkv, wp, bp)

    # permute(0, 2, 1).view(B, C, H, W) — pure layout, done outside the kernel.
    return out2.reshape(B, N, C).transpose(0, 2, 1).reshape(B, C, H, W)


def cross_fusion_reference(x, y, params, *, num_heads):
    """Pure-JAX f32 reference mirroring the PyTorch forward."""
    B, N, C = x.shape
    H = int(math.sqrt(N))
    hd = C // num_heads
    scale = hd ** (-0.5)
    wq, bq, wkv, bkv, wp, bp = params

    q = x @ wq + bq                                   # (B, N, C)
    kv = y @ wkv + bkv                                # (B, N, 2C)
    kv = kv.reshape(B, N, 2, num_heads, hd).transpose(2, 0, 3, 1, 4)
    k, v = kv[0], kv[1]                               # (B, nh, N, hd)
    q = q.reshape(B, N, num_heads, hd).transpose(0, 2, 1, 3) * scale
    attn = q @ k.transpose(0, 1, 3, 2)                # (B, nh, N, N)
    attn = jax.nn.softmax(attn, axis=-1)
    out = (attn @ v).transpose(0, 2, 1, 3).reshape(B, N, C)
    out = out @ wp + bp
    return out.transpose(0, 2, 1).reshape(B, C, H, H)


if __name__ == "__main__":
    # Small shapes consistent with the module: dim=C=32, num_heads=4,
    # tokens N=16 (H=W=4), batch B=2.
    B, N, C = 2, 16, 32
    num_heads = 4

    key = jax.random.PRNGKey(0)
    kx, ky, k1, k2, k3, k4, k5, k6 = jax.random.split(key, 8)

    x = jax.random.normal(kx, (B, N, C), dtype=jnp.float32)
    y = jax.random.normal(ky, (B, N, C), dtype=jnp.float32)

    # Deterministic parameter init (Linear weights stored as (in, out)).
    s = 0.05
    wq = s * jax.random.normal(k1, (C, C), dtype=jnp.float32)
    bq = s * jax.random.normal(k2, (1, C), dtype=jnp.float32)
    wkv = s * jax.random.normal(k3, (C, 2 * C), dtype=jnp.float32)
    bkv = s * jax.random.normal(k4, (1, 2 * C), dtype=jnp.float32)
    wp = s * jax.random.normal(k5, (C, C), dtype=jnp.float32)
    bp = s * jax.random.normal(k6, (1, C), dtype=jnp.float32)
    params = (wq, bq, wkv, bkv, wp, bp)

    out = cross_fusion(x, y, params, num_heads=num_heads)
    out = jax.block_until_ready(out)

    ref = cross_fusion_reference(x, y, params, num_heads=num_heads)
    assert out.shape == (B, C, 4, 4), out.shape
    # Tolerance accounts for bf16 MXU operands (f32 accumulation) and the EUP
    # approximate reciprocal in the softmax normalization.
    assert jnp.allclose(out, ref, atol=4e-3, rtol=4e-3), "mismatch vs reference"

    print("KERNEL_OK")
</pallas_src>

<mosaic_0001>
module attributes {stable_mosaic.version = 11 : i64} {
  func.func @_cross_fusion_kernel(%arg0: i32, %arg1: memref<32x32xf32, #tpu.memory_space<vmem>>, %arg2: memref<32x32xf32, #tpu.memory_space<vmem>>, %arg3: memref<32x96xf32, #tpu.memory_space<vmem>>, %arg4: memref<1x96xf32, #tpu.memory_space<vmem>>, %arg5: memref<32x32xf32, #tpu.memory_space<vmem>>, %arg6: memref<1x32xf32, #tpu.memory_space<vmem>>, %arg7: memref<32x32xf32, #tpu.memory_space<vmem>>, %arg8: memref<32x32xf32, #tpu.memory_space<vmem>>) attributes {dimension_semantics = [#tpu.dimension_semantics<arbitrary>], iteration_bounds = array<i64: 1>, scalar_prefetch = 0 : i64, scratch_operands = 1 : i64, tpu.core_type = #tpu.core_type<tc>, window_params = [{pipeline_mode = #tpu.pipeline_mode<synchronous>, transform_indices = @transform_0, window_bounds = array<i64: 32, 32>}, {pipeline_mode = #tpu.pipeline_mode<synchronous>, transform_indices = @transform_1, window_bounds = array<i64: 32, 32>}, {pipeline_mode = #tpu.pipeline_mode<synchronous>, transform_indices = @transform_2, window_bounds = array<i64: 32, 96>}, {pipeline_mode = #tpu.pipeline_mode<synchronous>, transform_indices = @transform_3, window_bounds = array<i64: 1, 96>}, {pipeline_mode = #tpu.pipeline_mode<synchronous>, transform_indices = @transform_4, window_bounds = array<i64: 32, 32>}, {pipeline_mode = #tpu.pipeline_mode<synchronous>, transform_indices = @transform_5, window_bounds = array<i64: 1, 32>}, {pipeline_mode = #tpu.pipeline_mode<synchronous>, transform_indices = @transform_6, window_bounds = array<i64: 32, 32>}]} {
    %c0 = arith.constant 0 : index
    %c0_0 = arith.constant 0 : index
    %0 = vector.load %arg1[%c0, %c0_0] : memref<32x32xf32, #tpu.memory_space<vmem>>, vector<32x32xf32>
    %c0_1 = arith.constant 0 : index
    %c0_2 = arith.constant 0 : index
    %1 = vector.load %arg2[%c0_1, %c0_2] : memref<32x32xf32, #tpu.memory_space<vmem>>, vector<32x32xf32>
    %2 = tpu.concatenate %0, %1 in 0 : vector<32x32xf32>, vector<32x32xf32> -> vector<64x32xf32>
    %3 = arith.truncf %2 : vector<64x32xf32> to vector<64x32xbf16>
    %c0_3 = arith.constant 0 : index
    %c0_4 = arith.constant 0 : index
    %4 = vector.load %arg3[%c0_3, %c0_4] : memref<32x96xf32, #tpu.memory_space<vmem>>, vector<32x96xf32>
    %5 = arith.truncf %4 : vector<32x96xf32> to vector<32x96xbf16>
    %cst = arith.constant dense<0.000000e+00> : vector<64x96xf32>
    %6 = tpu.matmul %3, %5, %cst {dimension_numbers = #tpu.dot_dimension_numbers<[1], [0], [0], [1], [0, 0, 1, 1], [], []>} : vector<64x32xbf16>, vector<32x96xbf16>, vector<64x96xf32> -> vector<64x96xf32>
    %c0_5 = arith.constant 0 : index
    %c0_6 = arith.constant 0 : index
    %7 = vector.load %arg4[%c0_5, %c0_6] : memref<1x96xf32, #tpu.memory_space<vmem>>, vector<1x96xf32>
    %8 = vector.broadcast %7 : vector<1x96xf32> to vector<64x96xf32>
    %9 = arith.addf %6, %8 : vector<64x96xf32>
    %10 = vector.extract_strided_slice %9 {offsets = [0, 0], sizes = [32, 8], strides = [1, 1]} : vector<64x96xf32> to vector<32x8xf32>
    %11 = vector.shape_cast %10 : vector<32x8xf32> to vector<2x16x8xf32>
    %12 = vector.extract_strided_slice %9 {offsets = [0, 8], sizes = [32, 8], strides = [1, 1]} : vector<64x96xf32> to vector<32x8xf32>
    %13 = vector.shape_cast %12 : vector<32x8xf32> to vector<2x16x8xf32>
    %14 = vector.extract_strided_slice %9 {offsets = [0, 16], sizes = [32, 8], strides = [1, 1]} : vector<64x96xf32> to vector<32x8xf32>
    %15 = vector.shape_cast %14 : vector<32x8xf32> to vector<2x16x8xf32>
    %16 = vector.extract_strided_slice %9 {offsets = [0, 24], sizes = [32, 8], strides = [1, 1]} : vector<64x96xf32> to vector<32x8xf32>
    %17 = vector.shape_cast %16 : vector<32x8xf32> to vector<2x16x8xf32>
    %18 = tpu.concatenate %11, %13, %15, %17 in 0 : vector<2x16x8xf32>, vector<2x16x8xf32>, vector<2x16x8xf32>, vector<2x16x8xf32> -> vector<8x16x8xf32>
    %19 = arith.truncf %18 : vector<8x16x8xf32> to vector<8x16x8xbf16>
    %20 = vector.extract_strided_slice %9 {offsets = [32, 32], sizes = [32, 8], strides = [1, 1]} : vector<64x96xf32> to vector<32x8xf32>
    %21 = vector.shape_cast %20 : vector<32x8xf32> to vector<2x16x8xf32>
    %22 = vector.extract_strided_slice %9 {offsets = [32, 40], sizes = [32, 8], strides = [1, 1]} : vector<64x96xf32> to vector<32x8xf32>
    %23 = vector.shape_cast %22 : vector<32x8xf32> to vector<2x16x8xf32>
    %24 = vector.extract_strided_slice %9 {offsets = [32, 48], sizes = [32, 8], strides = [1, 1]} : vector<64x96xf32> to vector<32x8xf32>
    %25 = vector.shape_cast %24 : vector<32x8xf32> to vector<2x16x8xf32>
    %26 = vector.extract_strided_slice %9 {offsets = [32, 56], sizes = [32, 8], strides = [1, 1]} : vector<64x96xf32> to vector<32x8xf32>
    %27 = vector.shape_cast %26 : vector<32x8xf32> to vector<2x16x8xf32>
    %28 = tpu.concatenate %21, %23, %25, %27 in 0 : vector<2x16x8xf32>, vector<2x16x8xf32>, vector<2x16x8xf32>, vector<2x16x8xf32> -> vector<8x16x8xf32>
    %29 = arith.truncf %28 : vector<8x16x8xf32> to vector<8x16x8xbf16>
    %30 = vector.extract_strided_slice %9 {offsets = [32, 64], sizes = [32, 8], strides = [1, 1]} : vector<64x96xf32> to vector<32x8xf32>
    %31 = vector.shape_cast %30 : vector<32x8xf32> to vector<2x16x8xf32>
    %32 = vector.extract_strided_slice %9 {offsets = [32, 72], sizes = [32, 8], strides = [1, 1]} : vector<64x96xf32> to vector<32x8xf32>
    %33 = vector.shape_cast %32 : vector<32x8xf32> to vector<2x16x8xf32>
    %34 = vector.extract_strided_slice %9 {offsets = [32, 80], sizes = [32, 8], strides = [1, 1]} : vector<64x96xf32> to vector<32x8xf32>
    %35 = vector.shape_cast %34 : vector<32x8xf32> to vector<2x16x8xf32>
    %36 = vector.extract_strided_slice %9 {offsets = [32, 88], sizes = [32, 8], strides = [1, 1]} : vector<64x96xf32> to vector<32x8xf32>
    %37 = vector.shape_cast %36 : vector<32x8xf32> to vector<2x16x8xf32>
    %38 = tpu.concatenate %31, %33, %35, %37 in 0 : vector<2x16x8xf32>, vector<2x16x8xf32>, vector<2x16x8xf32>, vector<2x16x8xf32> -> vector<8x16x8xf32>
    %39 = arith.truncf %38 : vector<8x16x8xf32> to vector<8x16x8xbf16>
    "tpu.trace_start"() <{level = 10 : i32, message = "gqd,gkd->gqk"}> : () -> ()
    %cst_7 = arith.constant dense<0.000000e+00> : vector<8x16x16xf32>
    %40 = tpu.matmul %19, %29, %cst_7 {dimension_numbers = #tpu.dot_dimension_numbers<[2], [2], [1], [1], [0, 0, 0, 1, 1, 1], [0], [0]>} : vector<8x16x8xbf16>, vector<8x16x8xbf16>, vector<8x16x16xf32> -> vector<8x16x16xf32>
    "tpu.trace_stop"() : () -> ()
    %cst_8 = arith.constant dense<0xFF800000> : vector<8x16xf32>
    %41 = vector.multi_reduction <maximumf>, %40, %cst_8 [2] : vector<8x16x16xf32> to vector<8x16xf32>
    %42 = vector.shape_cast %41 : vector<8x16xf32> to vector<8x16x1xf32>
    %43 = vector.broadcast %42 : vector<8x16x1xf32> to vector<8x16x16xf32>
    %44 = arith.subf %40, %43 : vector<8x16x16xf32>
    %45 = math.exp %44 : vector<8x16x16xf32>
    %cst_9 = arith.constant dense<0.000000e+00> : vector<8x16xf32>
    %46 = vector.multi_reduction <add>, %45, %cst_9 [2] : vector<8x16x16xf32> to vector<8x16xf32>
    %47 = vector.shape_cast %46 : vector<8x16xf32> to vector<8x16x1xf32>
    %48 = tpu.reciprocal %47 {approx = true} : vector<8x16x1xf32> -> vector<8x16x1xf32>
    %49 = vector.broadcast %48 : vector<8x16x1xf32> to vector<8x16x16xf32>
    %50 = arith.mulf %45, %49 : vector<8x16x16xf32>
    %51 = arith.truncf %50 : vector<8x16x16xf32> to vector<8x16x16xbf16>
    "tpu.trace_start"() <{level = 10 : i32, message = "gqk,gkd->gqd"}> : () -> ()
    %cst_10 = arith.constant dense<0.000000e+00> : vector<8x16x8xf32>
    %52 = tpu.matmul %51, %39, %cst_10 {dimension_numbers = #tpu.dot_dimension_numbers<[2], [1], [1], [2], [0, 0, 0, 1, 1, 2], [0], [0]>} : vector<8x16x16xbf16>, vector<8x16x8xbf16>, vector<8x16x8xf32> -> vector<8x16x8xf32>
    "tpu.trace_stop"() : () -> ()
    %53 = vector.extract_strided_slice %52 {offsets = [0, 0, 0], sizes = [2, 16, 8], strides = [1, 1, 1]} : vector<8x16x8xf32> to vector<2x16x8xf32>
    %54 = vector.shape_cast %53 : vector<2x16x8xf32> to vector<32x8xf32>
    %c0_11 = arith.constant 0 : index
    %c0_12 = arith.constant 0 : index
    %55 = vector.load %arg8[%c0_11, %c0_12] : memref<32x32xf32, #tpu.memory_space<vmem>>, vector<32x8xf32>
    tpu.vector_store %arg8[%c0_11, %c0_12], %54 {strides = array<i32>} : memref<32x32xf32, #tpu.memory_space<vmem>>, vector<32x8xf32>,
    %56 = vector.extract_strided_slice %52 {offsets = [2, 0, 0], sizes = [2, 16, 8], strides = [1, 1, 1]} : vector<8x16x8xf32> to vector<2x16x8xf32>
    %57 = vector.shape_cast %56 : vector<2x16x8xf32> to vector<32x8xf32>
    %c0_13 = arith.constant 0 : index
    %c8 = arith.constant 8 : index
    %58 = vector.load %arg8[%c0_13, %c8] : memref<32x32xf32, #tpu.memory_space<vmem>>, vector<32x8xf32>
    tpu.vector_store %arg8[%c0_13, %c8], %57 {strides = array<i32>} : memref<32x32xf32, #tpu.memory_space<vmem>>, vector<32x8xf32>,
    %59 = vector.extract_strided_slice %52 {offsets = [4, 0, 0], sizes = [2, 16, 8], strides = [1, 1, 1]} : vector<8x16x8xf32> to vector<2x16x8xf32>
    %60 = vector.shape_cast %59 : vector<2x16x8xf32> to vector<32x8xf32>
    %c0_14 = arith.constant 0 : index
    %c16 = arith.constant 16 : index
    %61 = vector.load %arg8[%c0_14, %c16] : memref<32x32xf32, #tpu.memory_space<vmem>>, vector<32x8xf32>
    tpu.vector_store %arg8[%c0_14, %c16], %60 {strides = array<i32>} : memref<32x32xf32, #tpu.memory_space<vmem>>, vector<32x8xf32>,
    %62 = vector.extract_strided_slice %52 {offsets = [6, 0, 0], sizes = [2, 16, 8], strides = [1, 1, 1]} : vector<8x16x8xf32> to vector<2x16x8xf32>
    %63 = vector.shape_cast %62 : vector<2x16x8xf32> to vector<32x8xf32>
    %c0_15 = arith.constant 0 : index
    %c24 = arith.constant 24 : index
    %64 = vector.load %arg8[%c0_15, %c24] : memref<32x32xf32, #tpu.memory_space<vmem>>, vector<32x8xf32>
    tpu.vector_store %arg8[%c0_15, %c24], %63 {strides = array<i32>} : memref<32x32xf32, #tpu.memory_space<vmem>>, vector<32x8xf32>,
    %c0_16 = arith.constant 0 : index
    %c0_17 = arith.constant 0 : index
    %65 = vector.load %arg8[%c0_16, %c0_17] : memref<32x32xf32, #tpu.memory_space<vmem>>, vector<32x32xf32>
    %66 = arith.truncf %65 : vector<32x32xf32> to vector<32x32xbf16>
    %c0_18 = arith.constant 0 : index
    %c0_19 = arith.constant 0 : index
    %67 = vector.load %arg5[%c0_18, %c0_19] : memref<32x32xf32, #tpu.memory_space<vmem>>, vector<32x32xf32>
    %68 = arith.truncf %67 : vector<32x32xf32> to vector<32x32xbf16>
    %cst_20 = arith.constant dense<0.000000e+00> : vector<32x32xf32>
    %69 = tpu.matmul %66, %68, %cst_20 {dimension_numbers = #tpu.dot_dimension_numbers<[1], [0], [0], [1], [0, 0, 1, 1], [], []>} : vector<32x32xbf16>, vector<32x32xbf16>, vector<32x32xf32> -> vector<32x32xf32>
    %c0_21 = arith.constant 0 : index
    %c0_22 = arith.constant 0 : index
    %70 = vector.load %arg6[%c0_21, %c0_22] : memref<1x32xf32, #tpu.memory_space<vmem>>, vector<1x32xf32>
    %71 = vector.broadcast %70 : vector<1x32xf32> to vector<32x32xf32>
    %72 = arith.addf %69, %71 : vector<32x32xf32>
    %c0_23 = arith.constant 0 : index
    %c0_24 = arith.constant 0 : index
    %73 = vector.load %arg7[%c0_23, %c0_24] : memref<32x32xf32, #tpu.memory_space<vmem>>, vector<32x32xf32>
    tpu.vector_store %arg7[%c0_23, %c0_24], %72 {strides = array<i32>} : memref<32x32xf32, #tpu.memory_space<vmem>>, vector<32x32xf32>,
    return
  }
  func.func @transform_0(%arg0: i32) -> (i32, i32) {
    %c0_i32 = arith.constant 0 : i32
    %c0_i32_0 = arith.constant 0 : i32
    %c0_i32_1 = arith.constant 0 : i32
    return %c0_i32, %c0_i32_0 : i32, i32
  }
  func.func @transform_1(%arg0: i32) -> (i32, i32) {
    %c0_i32 = arith.constant 0 : i32
    %c0_i32_0 = arith.constant 0 : i32
    %c0_i32_1 = arith.constant 0 : i32
    return %c0_i32, %c0_i32_0 : i32, i32
  }
  func.func @transform_2(%arg0: i32) -> (i32, i32) {
    %c0_i32 = arith.constant 0 : i32
    %c0_i32_0 = arith.constant 0 : i32
    %c0_i32_1 = arith.constant 0 : i32
    return %c0_i32, %c0_i32_0 : i32, i32
  }
  func.func @transform_3(%arg0: i32) -> (i32, i32) {
    %c0_i32 = arith.constant 0 : i32
    %c0_i32_0 = arith.constant 0 : i32
    %c0_i32_1 = arith.constant 0 : i32
    return %c0_i32, %c0_i32_0 : i32, i32
  }
  func.func @transform_4(%arg0: i32) -> (i32, i32) {
    %c0_i32 = arith.constant 0 : i32
    %c0_i32_0 = arith.constant 0 : i32
    %c0_i32_1 = arith.constant 0 : i32
    return %c0_i32, %c0_i32_0 : i32, i32
  }
  func.func @transform_5(%arg0: i32) -> (i32, i32) {
    %c0_i32 = arith.constant 0 : i32
    %c0_i32_0 = arith.constant 0 : i32
    %c0_i32_1 = arith.constant 0 : i32
    return %c0_i32, %c0_i32_0 : i32, i32
  }
  func.func @transform_6(%arg0: i32) -> (i32, i32) {
    %c0_i32 = arith.constant 0 : i32
    %c0_i32_0 = arith.constant 0 : i32
    %c0_i32_1 = arith.constant 0 : i32
    return %c0_i32, %c0_i32_0 : i32, i32
  }
}

</mosaic_0001>

<bundles_post_ra>
// kernel: tpu_custom_call.1
= control target key start
LH: loop header
LB: loop body
LE: loop exit
PB: predicated region body
PF: predicated region fallthrough
CT: control target
= control target key end

     0   :  { %11 = vsyncpa [#allocation4], 0  ;;  %s2336_s0 = inlined_call_operand.hbm [shape: f32[32,32], index: 0, kind: input, shape index: {}]   ;;  %s2337_s1 = inlined_call_operand.hbm [shape: f32[32,32], index: 1, kind: input, shape index: {}]   ;;  %s2338_s2 = inlined_call_operand.hbm [shape: f32[32,96], index: 2, kind: input, shape index: {}]   ;;  %s2339_s3 = inlined_call_operand.vmem [shape: f32[1,96], index: 3, kind: input, shape index: {}]   ;;  %s2340_s4 = inlined_call_operand.hbm [shape: f32[32,32], index: 4, kind: input, shape index: {}]   ;;  %s2341_s5 = inlined_call_operand.vmem [shape: f32[1,32], index: 5, kind: input, shape index: {}]   ;;  %s2342_s6 = inlined_call_operand.hbm [shape: f32[32,32], index: 6, kind: output, shape index: {}]  }
   0x1   :  { %12 = vsyncpa [#allocation7], 0 }
   0x2   :  { %13 = vsyncpa [#allocation10], 0 }
   0x3   :  { %14 = vsyncpa [#allocation5], 0  ;;  %s1845_s21 = smov [#allocation6]   ;;  %s1846_s23 = smov [#allocation3]  }
   0x4   :  { %s32_s22 = sshll.u32 %s1845_s21, 4  ;;  %s20_s24 = sshll.u32 %s1846_s23, 4  ;;  %s33_s22 = int_to_ptr.vmem [resolvable:$true] %s32_s22  ;;  %s1896_s24 = int_to_ptr.vmem [resolvable:$true] %s20_s24 }
   0x5   :  { %s1727_s27 = scalar_lea.hbm %s2337_s1, 512 }
   0x6   :  { %p1728_p0 = scmp.ne.s32.totalorder %s2337_s1, %s1727_s27  ;;  %p1731_p1 = scmp.lt.u32.totalorder %s1727_s27, %s2337_s1 }
   0x8   :  { %p1733_p2 = pnand %p1731_p1, %p1728_p0 }
   0xa   :  { %1736 = shalt.err (!%p1733_p2)
}
   0xb   :  { %s1737_s8 = scalar_lea.vmem %s33_s22, 512  ;;  %p1742_p4 = scmp.lt.s32.totalorder %s33_s22, %s33_s22 }
   0xc   :  { %p1738_p3 = scmp.ne.s32.totalorder %s33_s22, %s1737_s8  ;;  %p1743_p5 = scmp.lt.s32.totalorder %s1737_s8, %s1737_s8 }
   0xe   :  { %p1744_p6 = por %p1743_p5, %p1742_p4 }
  0x10   :  { %p1745_p7 = pnand %p1744_p6, %p1738_p3 }
  0x12   :  { %1748 = shalt.err (!%p1745_p7)
}
  0x13   :  { %s1847_s9 = smov 128   ;;  %s1848_s10 = smov 8  }
  0x14   :  { %38 = dma.hbm_to_vmem [thread:$0]  %s2337_s1, 512, %s33_s22, [#allocation7], %s1847_s9, %s1847_s9, %s1848_s10  }
  0x15   :  { %s1749_s15 = scalar_lea.hbm %s2336_s0, 512 }
  0x16   :  { %p1750_p8 = scmp.ne.s32.totalorder %s2336_s0, %s1749_s15  ;;  %p1753_p9 = scmp.lt.u32.totalorder %s1749_s15, %s2336_s0 }
  0x18   :  { %p1755_p10 = pnand %p1753_p9, %p1750_p8 }
  0x1a   :  { %1758 = shalt.err (!%p1755_p10)
}
  0x1b   :  { %s1759_s20 = scalar_lea.vmem %s1896_s24, 512  ;;  %p1764_p12 = scmp.lt.s32.totalorder %s1896_s24, %s1896_s24 }
  0x1c   :  { %p1760_p11 = scmp.ne.s32.totalorder %s1896_s24, %s1759_s20  ;;  %p1765_p13 = scmp.lt.s32.totalorder %s1759_s20, %s1759_s20 }
  0x1e   :  { %p1766_p0 = por %p1765_p13, %p1764_p12 }
  0x20   :  { %p1767_p1 = pnand %p1766_p0, %p1760_p11 }
  0x22   :  { %1770 = shalt.err (!%p1767_p1)
}
  0x23   :  { %26 = dma.hbm_to_vmem [thread:$0]  %s2336_s0, 512, %s1896_s24, [#allocation4], %s1847_s9, %s1847_s9, %s1848_s10  }
  0x24   :  { %s1849_s22 = smov [#allocation8]   ;;  %s1850_s25 = smov [#allocation9]  }
  0x25   :  { %s44_s23 = sshll.u32 %s1849_s22, 4  ;;  %s58_s26 = sshll.u32 %s1850_s25, 4  ;;  %s45_s23 = int_to_ptr.vmem [resolvable:$true] %s44_s23  ;;  %s1933_s26 = int_to_ptr.vmem [resolvable:$true] %s58_s26 }
  0x26   :  { %s1771_s29 = scalar_lea.hbm %s2338_s2, 512 }
  0x27   :  { %p1772_p2 = scmp.ne.s32.totalorder %s2338_s2, %s1771_s29  ;;  %p1775_p3 = scmp.lt.u32.totalorder %s1771_s29, %s2338_s2 }
  0x29   :  { %p1777_p4 = pnand %p1775_p3, %p1772_p2 }
  0x2b   :  { %1780 = shalt.err (!%p1777_p4)
}
  0x2c   :  { %s1781_s0 = scalar_lea.vmem %s45_s23, 512  ;;  %p1786_p6 = scmp.lt.s32.totalorder %s45_s23, %s45_s23 }
  0x2d   :  { %p1782_p5 = scmp.ne.s32.totalorder %s45_s23, %s1781_s0  ;;  %p1787_p7 = scmp.lt.s32.totalorder %s1781_s0, %s1781_s0 }
  0x2f   :  { %p1788_p8 = por %p1787_p7, %p1786_p6 }
  0x31   :  { %p1789_p9 = pnand %p1788_p8, %p1782_p5 }
  0x33   :  { %1792 = shalt.err (!%p1789_p9)
}
  0x34   :  { %50 = dma.hbm_to_vmem [thread:$0]  %s2338_s2, 512, %s45_s23, [#allocation7], %s1847_s9, %s1847_s9, %s1848_s10  }
  0x35   :  { %s1793_s15 = scalar_lea.hbm %s2340_s4, 512 }
  0x36   :  { %p1794_p10 = scmp.ne.s32.totalorder %s2340_s4, %s1793_s15  ;;  %p1797_p11 = scmp.lt.u32.totalorder %s1793_s15, %s2340_s4 }
  0x38   :  { %p1799_p12 = pnand %p1797_p11, %p1794_p10 }
  0x3a   :  { %1802 = shalt.err (!%p1799_p12)
}
  0x3b   :  { %s1803_s20 = scalar_lea.vmem %s1933_s26, 512  ;;  %p1808_p0 = scmp.lt.s32.totalorder %s1933_s26, %s1933_s26 }
  0x3c   :  { %p1804_p13 = scmp.ne.s32.totalorder %s1933_s26, %s1803_s20  ;;  %p1809_p1 = scmp.lt.s32.totalorder %s1803_s20, %s1803_s20 }
  0x3e   :  { %p1810_p2 = por %p1809_p1, %p1808_p0 }
  0x40   :  { %p1811_p3 = pnand %p1810_p2, %p1804_p13 }
  0x42   :  { %1814 = shalt.err (!%p1811_p3)
}
  0x43   :  { %64 = dma.hbm_to_vmem [thread:$0]  %s2340_s4, 512, %s1933_s26, [#allocation10], %s1847_s9, %s1847_s9, %s1848_s10  }
  0x44   :  { %1837 = dma.done.wait [#allocation4], 512  }
  0x45   :  { %1838 = vsyncadd [#allocation4], 4294966784 }
  0x46   :  { %1839 = dma.done.wait [#allocation7], 1024  }
  0x47   :  { %1840 = vsyncadd [#allocation7], 4294966272 }
  0x48   :  { %1841 = dma.done.wait [#allocation10], 512  }
  0x49   :  { %1842 = vsyncadd [#allocation10], 4294966784  ;;  %v92_v0 = vld [vmem:[#allocation8] sm:$0xff]  ;;  %v93_v1 = vld [vmem:[#allocation8 + $0x8] sm:$0xff]  ;;  %vm105_vm0 = vcmask 261120   ;;  %s1852_s22 = smov 120  }
  0x4a   :  { %v94_v2 = vld [vmem:[#allocation8 + $0x10] sm:$0xff]  ;;  %v96_v3 = vpack.c.bf16 %v93_v1, %v92_v0  ;;  %v95_v4 = vld [vmem:[#allocation8 + $0x18] sm:$0xff]  ;;  %v80_v5 = vld [vmem:[#allocation3] sm:$0xff]  ;;  %v1853_v43 = vmov 0.0   ;;  %vm1854_vm1 = vmmov 0   ;;  %s1855_s23 = smov 104  }
  0x4b   :  { %v81_v6 = vld [vmem:[#allocation3 + $0x8] sm:$0xff]  ;;  %v97_v7 = vpack.c.bf16 %v95_v4, %v94_v2  ;;  %v82_v9 = vld [vmem:[#allocation3 + $0x10] sm:$0xff]  ;;  %v83_v10 = vld [vmem:[#allocation3 + $0x18] sm:$0xff]  ;;  %1483 = vmatprep.subr.bf16.mxu1 %v1853_v43  ;;  %1485 = vmatprep.mubr.msk.bf16.mxu1 %vm1854_vm1, %v1853_v43  ;;  %s1856_s25 = smov 96   ;;  %vm282_vm2 = vcmask 64512   ;;  %s1857_s26 = smov 64  }
  0x4c   :  { %v88_v8 = vpack.c.bf16 %v81_v6, %v80_v5  ;;  %1471 = vmatprep.subr.bf16.mxu0 %v96_v3  ;;  %v84_v11 = vld [vmem:[#allocation6] sm:$0xff]  ;;  %v85_v12 = vld [vmem:[#allocation6 + $0x8] sm:$0xff]  ;;  %v89_v13 = vpack.c.bf16 %v83_v10, %v82_v9  ;;  %v86_v15 = vld [vmem:[#allocation6 + $0x10] sm:$0xff]  ;;  %vm680_vm3 = vcmask 130048   ;;  %s1858_s27 = smov 16   ;;  %s1859_s28 = smov 24  }
  0x4d   :  { %1472 = vmatpush3.bf16.msra.mxu0 %v96_v3  ;;  %v90_v14 = vpack.c.bf16 %v85_v12, %v84_v11  ;;  %v87_v16 = vld [vmem:[#allocation6 + $0x18] sm:$0xff]  ;;  %v1405_v18 = vld [vmem:[%s2339_s3] ss:$0 sm:$0xff]  ;;  %s1851_s3 = smov 112   ;;  %vm1261_vm4 = vcmask 130112   ;;  %vm1282_vm5 = vcmask 195712  }
  0x4e   :  { %1475 = vmatprep.mubr.msk.bf16.mxu0 %vm105_vm0, %v88_v8  ;;  %1473 = vmatprep.subr.bf16.mxu0 %v97_v7  ;;  %v91_v17 = vpack.c.bf16 %v87_v16, %v86_v15  ;;  %vm1303_vm6 = vcmask 261312   ;;  %s1860_s7 = smov [#allocation11]  }
  0x4f   :  { %s1391_s8 = sshll.u32 %s1860_s7, 4  ;;  %s1392_s8 = int_to_ptr.vmem [resolvable:$true] %s1391_s8 }
  0x50   :  { %p1820_p5 = scmp.lt.s32.totalorder %s1392_s8, %s1392_s8 }
  0x51   :  { %1474 = vmatpush3.bf16.msra.mxu0 %v97_v7 }
  0x52   :  { %1495 = vmatprep.subr.bf16.mxu0 %v1853_v43 }
  0x54   :  { %1476 = vmatmul.mubr.msk.bf16.vlgmr.msra.gmra.mrb[0].mxu0 %vm105_vm0, %v89_v13 }
  0x55   :  { %1479 = vmatprep.mubr.msk.bf16.mxu0 %vm105_vm0, %v90_v14 }
  0x5c   :  { %1480 = vmatmul.mubr.msk.bf16.gmra.mrb[4].mxu0 %vm105_vm0, %v91_v17 }
  0x5d   :  { %1497 = vmatprep.mubr.msk.bf16.mxu0 %vm1854_vm1, %v1853_v43 }
 0x127   :  { %v1477_v19 = vpop.f32.mrb[0].mxu0 }
 0x128   :  { %v1977_v20 = vadd.f32 %v1477_v19, %v1405_v18  ;;  %v152_v21 = vpop.f32.mrb[1].mxu0 }
 0x129   :  { %v1979_v22 = vadd.f32 %v1405_v18, %v152_v21  ;;  %v1478_v23 = vpop.f32.mrb[2].mxu0 }
 0x12a   :  { %v1981_v24 = vadd.f32 %v1478_v23, %v1405_v18  ;;  %v155_v25 = vpop.f32.mrb[3].mxu0 }
 0x12b   :  { %v1983_v26 = vadd.f32 %v1405_v18, %v155_v25 }
 0x12c   :  { %v224_v27 = vpack.c.bf16 %v1981_v24, %v1977_v20  ;;  %v1989_v28 = vpack.i.bf16 %v1981_v24, %v1977_v20 }
 0x12d   :  { %v1993_v29 = vpack.i.bf16 %v1983_v26, %v1979_v22  ;;  %v223_v30 = vpack.c.bf16 %v1983_v26, %v1979_v22 }
 0x12f   :  { %v1481_v31 = vpop.f32.mrb[4].mxu0 }
 0x130   :  { %v168_v32 = vpop.f32.mrb[5].mxu0  ;;  %v177_v34 = vadd.f32 %v1481_v31, %v1405_v18 }
 0x131   :  { %v1482_v33 = vpop.f32.mrb[6].mxu0  ;;  %v169_v37 = vadd.f32 %v1405_v18, %v168_v32 }
 0x132   :  { %v180_v35 = vadd.f32 %v1482_v33, %v1405_v18  ;;  %v171_v36 = vpop.f32.mrb[7].mxu0 }
 0x133   :  { %v172_v38 = vadd.f32 %v1405_v18, %v171_v36 }
 0x134   :  { %v1618_v39 = vpack.i.bf16 %v180_v35, %v177_v34  ;;  %v1997_v40 = vpack.c.bf16 %v180_v35, %v177_v34 }
 0x135   :  { %v1613_v41 = vpack.i.bf16 %v172_v38, %v169_v37  ;;  %v1999_v42 = vpack.c.bf16 %v172_v38, %v169_v37 }
 0x137   :  { %1614 = vrot.lane.b32.xlu1 %v1613_v41, %s1851_s3  ;;  %1604 = vrot.lane.b32.xlu0 %v1613_v41, %s1852_s22 }
 0x13b   :  { %1619 = vrot.lane.b32.xlu1 %v1618_v39, %s1851_s3  ;;  %1609 = vrot.lane.b32.xlu0 %v1618_v39, %s1852_s22 }
 0x13f   :  { %1629 = vrot.lane.b32.xlu1 %v1618_v39, %s1855_s23  ;;  %1624 = vrot.lane.b32.xlu0 %v1613_v41, %s1855_s23 }
 0x143   :  { %331 = vrot.lane.b32.xlu1 %v1997_v40, %s1856_s25  ;;  %280 = vrot.lane.b32.xlu0 %v1999_v42, %s1856_s25 }
 0x1a9   :  { %v1605_v44 = vpop.permute.xlu0 %1604  ;;  %v1615_v45 = vpop.permute.xlu1 %1614 }
 0x1aa   :  { %v1607_v46 = vunpack.i.h.bf16 %v1605_v44  ;;  %v1606_v47 = vunpack.i.l.bf16 %v1605_v44  ;;  %v1617_v52 = vunpack.i.h.bf16 %v1615_v45  ;;  %v1616_v53 = vunpack.i.l.bf16 %v1615_v45 }
 0x1ac   :  { %v2017_v48 = vpack.c.bf16 %v1607_v46, %v1606_v47  ;;  %v2027_v57 = vpack.c.bf16 %v1617_v52, %v1616_v53 }
 0x1ad   :  { %v1610_v49 = vpop.permute.xlu0 %1609  ;;  %v1620_v54 = vpop.permute.xlu1 %1619 }
 0x1ae   :  { %v1612_v50 = vunpack.i.h.bf16 %v1610_v49  ;;  %v1611_v51 = vunpack.i.l.bf16 %v1610_v49  ;;  %381 = vrot.lane.b32.xlu0 %v2017_v48, %s1856_s25  ;;  %v1622_v58 = vunpack.i.h.bf16 %v1620_v54  ;;  %v1621_v59 = vunpack.i.l.bf16 %v1620_v54 }
 0x1b0   :  { %v2021_v55 = vpack.c.bf16 %v1612_v50, %v1611_v51  ;;  %v2034_v63 = vpack.c.bf16 %v1622_v58, %v1621_v59 }
 0x1b1   :  { %v1625_v56 = vpop.permute.xlu0 %1624  ;;  %v1630_v61 = vpop.permute.xlu1 %1629 }
 0x1b2   :  { %431 = vrot.lane.b32.xlu1 %v2021_v55, %s1856_s25  ;;  %1634 = vrot.lane.b32.xlu0 %v1993_v29, %s1852_s22  ;;  %v1627_v0 = vunpack.i.h.bf16 %v1625_v56  ;;  %v1626_v1 = vunpack.i.l.bf16 %v1625_v56  ;;  %v1632_v2 = vunpack.i.h.bf16 %v1630_v61  ;;  %v1631_v3 = vunpack.i.l.bf16 %v1630_v61 }
 0x1b4   :  { %v2041_v4 = vpack.c.bf16 %v1627_v0, %v1626_v1  ;;  %v2052_v7 = vpack.c.bf16 %v1632_v2, %v1631_v3 }
 0x1b5   :  { %v281_v60 = vpop.permute.xlu0 %280  ;;  %v332_v5 = vpop.permute.xlu1 %331 }
 0x1b6   :  { %1639 = vrot.lane.b32.xlu1 %v1989_v28, %s1852_s22  ;;  %481 = vrot.lane.b32.xlu0 %v2027_v57, %s1856_s25  ;;  %v287_v62 = vsel %vm282_vm2, %v281_v60, 0  ;;  %v337_v6 = vsel %vm282_vm2, %v332_v5, 0 }
 0x1b7   :  { %1484 = vmatpush3.bf16.xpose.msra.mxu1 %v287_v62 }
 0x1b8   :  { %1489 = vmatprep.subr.bf16.mxu1 %v1853_v43 }
 0x1ba   :  { %531 = vrot.lane.b32.xlu1 %v2034_v63, %s1856_s25  ;;  %1644 = vrot.lane.b32.xlu0 %v1993_v29, %s1851_s3 }
 0x1be   :  { %1649 = vrot.lane.b32.xlu1 %v1989_v28, %s1851_s3  ;;  %581 = vrot.lane.b32.xlu0 %v2041_v4, %s1856_s25 }
 0x1bf   :  { %1486 = vmatmul.mubr.msk.bf16.vlgmr.msra.gmra.mrb[0].mxu1 %vm282_vm2, %v223_v30 }
 0x1c0   :  { %1490 = vmatpush3.bf16.xpose.msra.mxu1 %v337_v6  ;;  %1491 = vmatprep.mubr.msk.bf16.mxu1 %vm1854_vm1, %v1853_v43 }
 0x1c1   :  { %1501 = vmatprep.subr.bf16.mxu1 %v1853_v43 }
 0x1c2   :  { %631 = vrot.lane.b32.xlu1 %v2052_v7, %s1856_s25  ;;  %1654 = vrot.lane.b32.xlu0 %v1993_v29, %s1855_s23 }
 0x1c6   :  { %1659 = vrot.lane.b32.xlu1 %v1989_v28, %s1855_s23 }
 0x1c7   :  { %1492 = vmatmul.mubr.msk.bf16.vlgmr.msra.gmra.mrb[4].mxu1 %vm282_vm2, %v224_v27 }
 0x1c8   :  { %1503 = vmatprep.mubr.msk.bf16.mxu1 %vm1854_vm1, %v1853_v43 }
 0x1ca   :  { %865 = vrot.lane.b32.xlu1 %v1999_v42, %s1857_s26 }
 0x220   :  { %v382_v8 = vpop.permute.xlu0 %381 }
 0x221   :  { %v387_v9 = vsel %vm282_vm2, %v382_v8, 0 }
 0x222   :  { %1496 = vmatpush3.bf16.xpose.msra.mxu0 %v387_v9 }
 0x223   :  { %1507 = vmatprep.subr.bf16.mxu0 %v1853_v43 }
 0x224   :  { %v432_v10 = vpop.permute.xlu1 %431  ;;  %v1635_v11 = vpop.permute.xlu0 %1634 }
 0x225   :  { %v437_v12 = vsel %vm282_vm2, %v432_v10, 0  ;;  %v1637_v13 = vunpack.i.h.bf16 %v1635_v11  ;;  %v1636_v14 = vunpack.i.l.bf16 %v1635_v11 }
 0x226   :  { %1502 = vmatpush3.bf16.xpose.msra.mxu1 %v437_v12 }
 0x227   :  { %v225_v15 = vpack.c.bf16 %v1637_v13, %v1636_v14  ;;  %1513 = vmatprep.subr.bf16.mxu1 %v1853_v43 }
 0x228   :  { %v1640_v16 = vpop.permute.xlu1 %1639  ;;  %v482_v17 = vpop.permute.xlu0 %481 }
 0x229   :  { %v1642_v18 = vunpack.i.h.bf16 %v1640_v16  ;;  %v1641_v19 = vunpack.i.l.bf16 %v1640_v16  ;;  %v487_v20 = vsel %vm282_vm2, %v482_v17, 0  ;;  %1498 = vmatmul.mubr.msk.bf16.vlgmr.msra.gmra.mrb[8].mxu0 %vm282_vm2, %v225_v15 }
 0x22a   :  { %1508 = vmatpush3.bf16.xpose.msra.mxu0 %v487_v20  ;;  %1509 = vmatprep.mubr.msk.bf16.mxu0 %vm1854_vm1, %v1853_v43 }
 0x22b   :  { %v226_v21 = vpack.c.bf16 %v1642_v18, %v1641_v19  ;;  %1519 = vmatprep.subr.bf16.mxu0 %v1853_v43 }
 0x22c   :  { %v532_v22 = vpop.permute.xlu1 %531  ;;  %v1645_v23 = vpop.permute.xlu0 %1644 }
 0x22d   :  { %v537_v24 = vsel %vm282_vm2, %v532_v22, 0  ;;  %v1647_v25 = vunpack.i.h.bf16 %v1645_v23  ;;  %v1646_v26 = vunpack.i.l.bf16 %v1645_v23  ;;  %1504 = vmatmul.mubr.msk.bf16.vlgmr.msra.gmra.mrb[8].mxu1 %vm282_vm2, %v226_v21 }
 0x22e   :  { %1514 = vmatpush3.bf16.xpose.msra.mxu1 %v537_v24  ;;  %1515 = vmatprep.mubr.msk.bf16.mxu1 %vm1854_vm1, %v1853_v43 }
 0x22f   :  { %v227_v27 = vpack.c.bf16 %v1647_v25, %v1646_v26  ;;  %1525 = vmatprep.subr.bf16.mxu1 %v1853_v43 }
 0x230   :  { %v1650_v28 = vpop.permute.xlu1 %1649  ;;  %v582_v29 = vpop.permute.xlu0 %581 }
 0x231   :  { %v1652_v30 = vunpack.i.h.bf16 %v1650_v28  ;;  %v1651_v31 = vunpack.i.l.bf16 %v1650_v28  ;;  %v587_v32 = vsel %vm282_vm2, %v582_v29, 0  ;;  %1510 = vmatmul.mubr.msk.bf16.vlgmr.msra.gmra.mrb[12].mxu0 %vm282_vm2, %v227_v27 }
 0x232   :  { %1520 = vmatpush3.bf16.xpose.msra.mxu0 %v587_v32  ;;  %1521 = vmatprep.mubr.msk.bf16.mxu0 %vm1854_vm1, %v1853_v43 }
 0x233   :  { %v228_v33 = vpack.c.bf16 %v1652_v30, %v1651_v31  ;;  %1531 = vmatprep.subr.bf16.mxu0 %v1853_v43 }
 0x234   :  { %v632_v34 = vpop.permute.xlu1 %631  ;;  %v1655_v35 = vpop.permute.xlu0 %1654 }
 0x235   :  { %v637_v36 = vsel %vm282_vm2, %v632_v34, 0  ;;  %v1657_v37 = vunpack.i.h.bf16 %v1655_v35  ;;  %v1656_v38 = vunpack.i.l.bf16 %v1655_v35  ;;  %1516 = vmatmul.mubr.msk.bf16.vlgmr.msra.gmra.mrb[12].mxu1 %vm282_vm2, %v228_v33 }
 0x236   :  { %1526 = vmatpush3.bf16.xpose.msra.mxu1 %v637_v36  ;;  %1527 = vmatprep.mubr.msk.bf16.mxu1 %vm1854_vm1, %v1853_v43 }
 0x237   :  { %v229_v39 = vpack.c.bf16 %v1657_v37, %v1656_v38  ;;  %1537 = vmatprep.subr.bf16.mxu1 %v1853_v43 }
 0x238   :  { %v1660_v41 = vpop.permute.xlu1 %1659 }
 0x239   :  { %v1662_v42 = vunpack.i.h.bf16 %v1660_v41  ;;  %v1661_v44 = vunpack.i.l.bf16 %v1660_v41  ;;  %1522 = vmatmul.mubr.msk.bf16.vlgmr.msra.gmra.mrb[16].mxu0 %vm282_vm2, %v229_v39 }
 0x23a   :  { %1533 = vmatprep.mubr.msk.bf16.mxu0 %vm1854_vm1, %v1853_v43 }
 0x23b   :  { %v230_v45 = vpack.c.bf16 %v1662_v42, %v1661_v44 }
 0x23c   :  { %v866_v46 = vpop.permute.xlu1 %865 }
 0x23d   :  { %1528 = vmatmul.mubr.msk.bf16.vlgmr.msra.gmra.mrb[16].mxu1 %vm282_vm2, %v230_v45  ;;  %1532 = vmatpush3.bf16.msra.mxu0 %v866_v46 }
 0x23e   :  { %1543 = vmatprep.subr.bf16.mxu0 %v1853_v43  ;;  %1539 = vmatprep.mubr.msk.bf16.mxu1 %vm1854_vm1, %v1853_v43 }
 0x292   :  { %v2102_v47 = vpop.f32.mrb[0].mxu1 }
 0x293   :  { %v1487_v49 = vpop.f32.mrb[1].mxu1  ;;  %v681_v50 = vsel %vm680_vm3, %v2102_v47, -inf }
 0x294   :  { %682 = vmax.xlane.f32.xlu0 %v681_v50  ;;  %v2106_v51 = vpop.f32.mrb[2].mxu1 }
 0x295   :  { %v1488_v52 = vpop.f32.mrb[3].mxu1  ;;  %v684_v53 = vsel %vm680_vm3, %v2106_v51, -inf }
 0x296   :  { %685 = vmax.xlane.f32.xlu1 %v684_v53 }
 0x29a   :  { %v2110_v54 = vpop.f32.mrb[4].mxu1 }
 0x29b   :  { %v1493_v56 = vpop.f32.mrb[5].mxu1  ;;  %v687_v58 = vsel %vm680_vm3, %v2110_v54, -inf }
 0x29c   :  { %688 = vmax.xlane.f32.xlu0 %v687_v58  ;;  %v2114_v59 = vpop.f32.mrb[6].mxu1 }
 0x29d   :  { %v1494_v60 = vpop.f32.mrb[7].mxu1  ;;  %v690_v61 = vsel %vm680_vm3, %v2114_v59, -inf }
 0x2a0   :  { %691 = vmax.xlane.f32.xlu0 %v690_v61 }
 0x2fc   :  { %v2118_v62 = vpop.f32.mrb[8].mxu0 }
 0x2fd   :  { %v1499_v0 = vpop.f32.mrb[9].mxu0  ;;  %v693_v13 = vsel %vm680_vm3, %v2118_v62, -inf }
 0x2fe   :  { %v2120_v1 = vpop.f32.mrb[10].mxu0 }
 0x2ff   :  { %v1500_v2 = vpop.f32.mrb[11].mxu0  ;;  %v696_v16 = vsel %vm680_vm3, %v2120_v1, -inf }
 0x300   :  { %v2122_v3 = vpop.f32.mrb[8].mxu1 }
 0x301   :  { %v1505_v5 = vpop.f32.mrb[9].mxu1  ;;  %v699_v6 = vsel %vm680_vm3, %v2122_v3, -inf }
 0x302   :  { %700 = vmax.xlane.f32.xlu1 %v699_v6  ;;  %v2126_v8 = vpop.f32.mrb[10].mxu1 }
 0x303   :  { %v1506_v9 = vpop.f32.mrb[11].mxu1  ;;  %v702_v10 = vsel %vm680_vm3, %v2126_v8, -inf }
 0x304   :  { %v2130_v11 = vpop.f32.mrb[12].mxu0  ;;  %703 = vmax.xlane.f32.xlu0 %v702_v10 }
 0x305   :  { %v1511_v12 = vpop.f32.mrb[13].mxu0  ;;  %v705_v25 = vsel %vm680_vm3, %v2130_v11, -inf }
 0x306   :  { %v2134_v14 = vpop.f32.mrb[14].mxu0  ;;  %694 = vmax.xlane.f32.xlu1 %v693_v13 }
 0x307   :  { %v1512_v15 = vpop.f32.mrb[15].mxu0  ;;  %v708_v28 = vsel %vm680_vm3, %v2134_v14, -inf }
 0x308   :  { %697 = vmax.xlane.f32.xlu0 %v696_v16  ;;  %v2138_v17 = vpop.f32.mrb[12].mxu1 }
 0x309   :  { %v1517_v18 = vpop.f32.mrb[13].mxu1  ;;  %v711_v19 = vsel %vm680_vm3, %v2138_v17, -inf }
 0x30a   :  { %712 = vmax.xlane.f32.xlu1 %v711_v19  ;;  %v2142_v20 = vpop.f32.mrb[14].mxu1 }
 0x30b   :  { %v1518_v21 = vpop.f32.mrb[15].mxu1  ;;  %v714_v22 = vsel %vm680_vm3, %v2142_v20, -inf }
 0x30c   :  { %v2146_v23 = vpop.f32.mrb[16].mxu0  ;;  %715 = vmax.xlane.f32.xlu0 %v714_v22 }
 0x30d   :  { %v1523_v24 = vpop.f32.mrb[17].mxu0  ;;  %v717_v35 = vsel %vm680_vm3, %v2146_v23, -inf }
 0x30e   :  { %v2150_v26 = vpop.f32.mrb[18].mxu0  ;;  %706 = vmax.xlane.f32.xlu1 %v705_v25 }
 0x30f   :  { %v1524_v27 = vpop.f32.mrb[19].mxu0  ;;  %v720_v36 = vsel %vm680_vm3, %v2150_v26, -inf }
 0x310   :  { %709 = vmax.xlane.f32.xlu0 %v708_v28  ;;  %v2154_v29 = vpop.f32.mrb[16].mxu1 }
 0x311   :  { %v1529_v30 = vpop.f32.mrb[17].mxu1  ;;  %v723_v31 = vsel %vm680_vm3, %v2154_v29, -inf }
 0x312   :  { %724 = vmax.xlane.f32.xlu1 %v723_v31  ;;  %v2158_v32 = vpop.f32.mrb[18].mxu1 }
 0x313   :  { %v1530_v33 = vpop.f32.mrb[19].mxu1  ;;  %v726_v34 = vsel %vm680_vm3, %v2158_v32, -inf }
 0x314   :  { %727 = vmax.xlane.f32.xlu0 %v726_v34 }
 0x316   :  { %718 = vmax.xlane.f32.xlu1 %v717_v35 }
 0x318   :  { %721 = vmax.xlane.f32.xlu0 %v720_v36 }
 0x321   :  { %v683_v37 = vpop.xlane.xlu0 %682 }
 0x323   :  { %v686_v39 = vpop.xlane.xlu1 %685 }
 0x324   :  { %v730_v41 = vsub.f32 %v2106_v51, %v686_v39 }
 0x326   :  { %v747_v44 = vmul.f32 1.442695, %v730_v41 }
 0x327   :  { %959 = vrot.lane.b32.xlu1 %v2017_v48, %s1857_s26  ;;  %v729_v48 = vsub.f32 %v2102_v47, %v683_v37 }
 0x328   :  { %1663 = vpow2.f32 %v747_v44 }
 0x329   :  { %v689_v38 = vpop.xlane.xlu0 %688  ;;  %v745_v45 = vmul.f32 1.442695, %v729_v48 }
 0x32b   :  { %1006 = vrot.lane.b32.xlu1 %v2021_v55, %s1857_s26  ;;  %1665 = vpow2.f32 %v745_v45 }
 0x32d   :  { %v692_v42 = vpop.xlane.xlu0 %691 }
 0x32e   :  { %912 = vrot.lane.b32.xlu0 %v1997_v40, %s1857_s26  ;;  %v732_v55 = vsub.f32 %v2114_v59, %v692_v42  ;;  %v731_v40 = vsub.f32 %v2110_v54, %v689_v38 }
 0x32f   :  { %1100 = vrot.lane.b32.xlu1 %v2034_v63, %s1857_s26 }
 0x330   :  { %v751_v46 = vmul.f32 1.442695, %v732_v55  ;;  %v749_v63 = vmul.f32 1.442695, %v731_v40 }
 0x332   :  { %1053 = vrot.lane.b32.xlu0 %v2027_v57, %s1857_s26  ;;  %1667 = vpow2.f32 %v751_v46  ;;  %v2180_v57 = vpop.eup %1663 }
 0x333   :  { %1669 = vpow2.f32 %v749_v63  ;;  %v780_v50 = vsel %vm680_vm3, %v2180_v57, 0.0 }
 0x335   :  { %v2182_v49 = vpop.eup %1665 }
 0x336   :  { %v777_v51 = vsel %vm680_vm3, %v2182_v49, 0.0 }
 0x33c   :  { %v2186_v47 = vpop.eup %1667 }
 0x33d   :  { %v2190_v52 = vpop.eup %1669  ;;  %v786_v53 = vsel %vm680_vm3, %v2186_v47, 0.0 }
 0x33e   :  { %v783_v54 = vsel %vm680_vm3, %v2190_v52, 0.0 }
 0x351   :  { %781 = vadd.xlane.f32.xlu0 %v780_v50 }
 0x353   :  { %778 = vadd.xlane.f32.xlu1 %v777_v51 }
 0x355   :  { %787 = vadd.xlane.f32.xlu0 %v786_v53 }
 0x357   :  { %784 = vadd.xlane.f32.xlu1 %v783_v54 }
 0x38f   :  { %v701_v56 = vpop.xlane.xlu1 %700 }
 0x390   :  { %v735_v58 = vsub.f32 %v2122_v3, %v701_v56 }
 0x391   :  { %v704_v59 = vpop.xlane.xlu0 %703 }
 0x392   :  { %v757_v60 = vmul.f32 1.442695, %v735_v58  ;;  %v736_v61 = vsub.f32 %v2126_v8, %v704_v59 }
 0x393   :  { %v695_v0 = vpop.xlane.xlu1 %694 }
 0x394   :  { %1671 = vpow2.f32 %v757_v60  ;;  %v759_v2 = vmul.f32 1.442695, %v736_v61  ;;  %v733_v5 = vsub.f32 %v2118_v62, %v695_v0 }
 0x395   :  { %v698_v6 = vpop.xlane.xlu0 %697 }
 0x396   :  { %1673 = vpow2.f32 %v759_v2  ;;  %v753_v9 = vmul.f32 1.442695, %v733_v5  ;;  %v734_v10 = vsub.f32 %v2120_v1, %v698_v6 }
 0x397   :  { %v713_v12 = vpop.xlane.xlu1 %712 }
 0x398   :  { %1675 = vpow2.f32 %v753_v9  ;;  %v755_v13 = vmul.f32 1.442695, %v734_v10  ;;  %v739_v15 = vsub.f32 %v2138_v17, %v713_v12 }
 0x399   :  { %v716_v3 = vpop.xlane.xlu0 %715 }
 0x39a   :  { %1677 = vpow2.f32 %v755_v13  ;;  %v765_v16 = vmul.f32 1.442695, %v739_v15  ;;  %v740_v8 = vsub.f32 %v2142_v20, %v716_v3 }
 0x39b   :  { %v707_v18 = vpop.xlane.xlu1 %706 }
 0x39c   :  { %1679 = vpow2.f32 %v765_v16  ;;  %v767_v19 = vmul.f32 1.442695, %v740_v8  ;;  %v737_v62 = vsub.f32 %v2130_v11, %v707_v18 }
 0x39d   :  { %v710_v21 = vpop.xlane.xlu0 %709 }
 0x39e   :  { %v2203_v22 = vpop.eup %1671  ;;  %1681 = vpow2.f32 %v767_v19  ;;  %v761_v1 = vmul.f32 1.442695, %v737_v62  ;;  %v738_v24 = vsub.f32 %v2134_v14, %v710_v21 }
 0x39f   :  { %v725_v25 = vpop.xlane.xlu1 %724  ;;  %v795_v17 = vsel %vm680_vm3, %v2203_v22, 0.0 }
 0x3a0   :  { %v2208_v27 = vpop.eup %1673  ;;  %1683 = vpow2.f32 %v761_v1  ;;  %v763_v20 = vmul.f32 1.442695, %v738_v24  ;;  %v743_v28 = vsub.f32 %v2154_v29, %v725_v25  ;;  %796 = vadd.xlane.f32.xlu1 %v795_v17 }
 0x3a1   :  { %v728_v30 = vpop.xlane.xlu0 %727  ;;  %v798_v11 = vsel %vm680_vm3, %v2208_v27, 0.0 }
 0x3a2   :  { %v2213_v31 = vpop.eup %1675  ;;  %1685 = vpow2.f32 %v763_v20  ;;  %v773_v33 = vmul.f32 1.442695, %v743_v28  ;;  %v744_v14 = vsub.f32 %v2158_v32, %v728_v30  ;;  %799 = vadd.xlane.f32.xlu0 %v798_v11 }
 0x3a3   :  { %v719_v34 = vpop.xlane.xlu1 %718  ;;  %v789_v35 = vsel %vm680_vm3, %v2213_v31, 0.0 }
 0x3a4   :  { %v2218_v36 = vpop.eup %1677  ;;  %1687 = vpow2.f32 %v773_v33  ;;  %v775_v29 = vmul.f32 1.442695, %v744_v14  ;;  %v741_v37 = vsub.f32 %v2146_v23, %v719_v34  ;;  %790 = vadd.xlane.f32.xlu1 %v789_v35 }
 0x3a5   :  { %v722_v38 = vpop.xlane.xlu0 %721  ;;  %v792_v39 = vsel %vm680_vm3, %v2218_v36, 0.0 }
 0x3a6   :  { %v2223_v41 = vpop.eup %1679  ;;  %1689 = vpow2.f32 %v775_v29  ;;  %v769_v32 = vmul.f32 1.442695, %v741_v37  ;;  %v742_v42 = vsub.f32 %v2150_v26, %v722_v38  ;;  %793 = vadd.xlane.f32.xlu0 %v792_v39 }
 0x3a7   :  { %v807_v48 = vsel %vm680_vm3, %v2223_v41, 0.0  ;;  %v960_v61 = vpop.permute.xlu1 %959 }
 0x3a8   :  { %v2228_v44 = vpop.eup %1681  ;;  %1691 = vpow2.f32 %v769_v32  ;;  %v771_v55 = vmul.f32 1.442695, %v742_v42  ;;  %808 = vadd.xlane.f32.xlu1 %v807_v48 }
 0x3a9   :  { %v913_v23 = vpop.permute.xlu0 %912  ;;  %v810_v45 = vsel %vm680_vm3, %v2228_v44, 0.0 }
 0x3aa   :  { %v2232_v40 = vpop.eup %1683  ;;  %1693 = vpow2.f32 %v771_v55  ;;  %811 = vadd.xlane.f32.xlu0 %v810_v45  ;;  %1538 = vmatpush3.bf16.msra.mxu1 %v913_v23 }
 0x3ab   :  { %v801_v26 = vsel %vm680_vm3, %v2232_v40, 0.0  ;;  %1549 = vmatprep.subr.bf16.mxu1 %v1853_v43  ;;  %v1007_v0 = vpop.permute.xlu1 %1006 }
 0x3ac   :  { %v2237_v46 = vpop.eup %1685  ;;  %802 = vadd.xlane.f32.xlu1 %v801_v26 }
 0x3ad   :  { %v804_v63 = vsel %vm680_vm3, %v2237_v46, 0.0  ;;  %v2261_v2 = vpop.permute.xlu0 %1053 }
 0x3ae   :  { %v2241_v50 = vpop.eup %1687  ;;  %805 = vadd.xlane.f32.xlu0 %v804_v63 }
 0x3af   :  { %v819_v51 = vsel %vm680_vm3, %v2241_v50, 0.0  ;;  %v1101_v5 = vpop.permute.xlu1 %1100 }
 0x3b0   :  { %v2245_v53 = vpop.eup %1689  ;;  %820 = vadd.xlane.f32.xlu1 %v819_v51 }
 0x3b1   :  { %v822_v54 = vsel %vm680_vm3, %v2245_v53, 0.0 }
 0x3b2   :  { %v2249_v56 = vpop.eup %1691  ;;  %823 = vadd.xlane.f32.xlu0 %v822_v54 }
 0x3b3   :  { %v813_v58 = vsel %vm680_vm3, %v2249_v56, 0.0 }
 0x3b4   :  { %v2253_v59 = vpop.eup %1693  ;;  %814 = vadd.xlane.f32.xlu1 %v813_v58 }
 0x3b5   :  { %v816_v60 = vsel %vm680_vm3, %v2253_v59, 0.0 }
 0x3b6   :  { %817 = vadd.xlane.f32.xlu0 %v816_v60 }
 0x3c5   :  { %1194 = vrot.lane.b32.xlu1 %v2052_v7, %s1857_s26 }
 0x3cc   :  { %1147 = vrot.lane.b32.xlu0 %v2041_v4, %s1857_s26 }
 0x3de   :  { %v782_v6 = vpop.xlane.xlu0 %781 }
 0x3df   :  { %1695 = vrcp.f32 %v782_v6 }
 0x3e0   :  { %v779_v9 = vpop.xlane.xlu1 %778 }
 0x3e1   :  { %1697 = vrcp.f32 %v779_v9 }
 0x3e2   :  { %v788_v10 = vpop.xlane.xlu0 %787 }
 0x3e3   :  { %1699 = vrcp.f32 %v788_v10 }
 0x3e4   :  { %v785_v12 = vpop.xlane.xlu1 %784 }
 0x3e5   :  { %1701 = vrcp.f32 %v785_v12 }
 0x3e9   :  { %v1696_v13 = vpop.eup %1695 }
 0x3ea   :  { %v842_v7 = vmul.f32 %v1696_v13, %v2180_v57 }
 0x3eb   :  { %v1698_v15 = vpop.eup %1697 }
 0x3ec   :  { %v841_v3 = vmul.f32 %v1698_v15, %v2182_v49 }
 0x3ed   :  { %v1700_v4 = vpop.eup %1699 }
 0x3ee   :  { %v857_v16 = vpack.c.bf16 %v842_v7, %v841_v3  ;;  %v844_v18 = vmul.f32 %v1700_v4, %v2186_v47 }
 0x3ef   :  { %v1702_v8 = vpop.eup %1701 }
 0x3f0   :  { %v843_v19 = vmul.f32 %v1702_v8, %v2190_v52  ;;  %1534 = vmatmul.mubr.msk.bf16.vlgmr.msra.gmra.mrb[20].mxu0 %vm680_vm3, %v857_v16 }
 0x3f1   :  { %1544 = vmatpush3.bf16.msra.mxu0 %v960_v61  ;;  %1545 = vmatprep.mubr.msk.bf16.mxu0 %vm1854_vm1, %v1853_v43 }
 0x3f2   :  { %v858_v62 = vpack.c.bf16 %v844_v18, %v843_v19  ;;  %1555 = vmatprep.subr.bf16.mxu0 %v1853_v43 }
 0x3f4   :  { %1540 = vmatmul.mubr.msk.bf16.vlgmr.msra.gmra.mrb[20].mxu1 %vm680_vm3, %v858_v62 }
 0x3f5   :  { %1550 = vmatpush3.bf16.msra.mxu1 %v1007_v0  ;;  %1551 = vmatprep.mubr.msk.bf16.mxu1 %vm1854_vm1, %v1853_v43 }
 0x3f6   :  { %1561 = vmatprep.subr.bf16.mxu1 %v1853_v43 }
 0x42d   :  { %v797_v57 = vpop.xlane.xlu1 %796 }
 0x42e   :  { %1703 = vrcp.f32 %v797_v57 }
 0x42f   :  { %v800_v49 = vpop.xlane.xlu0 %799 }
 0x430   :  { %1705 = vrcp.f32 %v800_v49 }
 0x431   :  { %v791_v47 = vpop.xlane.xlu1 %790 }
 0x432   :  { %1707 = vrcp.f32 %v791_v47 }
 0x433   :  { %v794_v52 = vpop.xlane.xlu0 %793 }
 0x434   :  { %1709 = vrcp.f32 %v794_v52  ;;  %v1314_v52 = vld [vmem:[#allocation9] sm:$0xff] }
 0x435   :  { %v809_v21 = vpop.xlane.xlu1 %808 }
 0x436   :  { %1711 = vrcp.f32 %v809_v21  ;;  %v1315_v21 = vld [vmem:[#allocation9 + $0x8] sm:$0xff] }
 0x437   :  { %v812_v1 = vpop.xlane.xlu0 %811 }
 0x438   :  { %v1704_v24 = vpop.eup %1703  ;;  %1713 = vrcp.f32 %v812_v1  ;;  %v1316_v1 = vld [vmem:[#allocation9 + $0x10] sm:$0xff] }
 0x439   :  { %v803_v25 = vpop.xlane.xlu1 %802  ;;  %v847_v20 = vmul.f32 %v1704_v24, %v2203_v22 }
 0x43a   :  { %v1706_v17 = vpop.eup %1705  ;;  %1715 = vrcp.f32 %v803_v25  ;;  %v1318_v25 = vpack.c.bf16 %v1315_v21, %v1314_v52 }
 0x43b   :  { %v848_v28 = vmul.f32 %v1706_v17, %v2208_v27  ;;  %v806_v30 = vpop.xlane.xlu0 %805  ;;  %v1317_v17 = vld [vmem:[#allocation9 + $0x18] sm:$0xff] }
 0x43c   :  { %v1708_v11 = vpop.eup %1707  ;;  %1717 = vrcp.f32 %v806_v30 }
 0x43d   :  { %v821_v33 = vpop.xlane.xlu1 %820  ;;  %v860_v14 = vpack.c.bf16 %v848_v28, %v847_v20  ;;  %v845_v35 = vmul.f32 %v1708_v11, %v2213_v31  ;;  %v1319_v28 = vpack.c.bf16 %v1317_v17, %v1316_v1 }
 0x43e   :  { %v1710_v34 = vpop.eup %1709  ;;  %1719 = vrcp.f32 %v821_v33 }
 0x43f   :  { %v846_v29 = vmul.f32 %v1710_v34, %v2218_v36  ;;  %1552 = vmatmul.mubr.msk.bf16.vlgmr.msra.gmra.mrb[24].mxu1 %vm680_vm3, %v860_v14  ;;  %v824_v37 = vpop.xlane.xlu0 %823 }
 0x440   :  { %v1712_v38 = vpop.eup %1711  ;;  %1562 = vmatpush3.bf16.msra.mxu1 %v1101_v5  ;;  %1721 = vrcp.f32 %v824_v37  ;;  %1563 = vmatprep.mubr.msk.bf16.mxu1 %vm1854_vm1, %v1853_v43 }
 0x441   :  { %v815_v22 = vpop.xlane.xlu1 %814  ;;  %v859_v27 = vpack.c.bf16 %v846_v29, %v845_v35  ;;  %1573 = vmatprep.subr.bf16.mxu1 %v1853_v43  ;;  %v851_v32 = vmul.f32 %v1712_v38, %v2223_v41 }
 0x442   :  { %v1714_v39 = vpop.eup %1713  ;;  %1723 = vrcp.f32 %v815_v22 }
 0x443   :  { %v852_v31 = vmul.f32 %v1714_v39, %v2228_v44  ;;  %1546 = vmatmul.mubr.msk.bf16.vlgmr.msra.gmra.mrb[24].mxu0 %vm680_vm3, %v859_v27  ;;  %v818_v36 = vpop.xlane.xlu0 %817 }
 0x444   :  { %v1716_v42 = vpop.eup %1715  ;;  %1556 = vmatpush3.bf16.msra.mxu0 %v2261_v2  ;;  %1725 = vrcp.f32 %v818_v36  ;;  %1557 = vmatprep.mubr.msk.bf16.mxu0 %vm1854_vm1, %v1853_v43 }
 0x445   :  { %v1195_v48 = vpop.permute.xlu1 %1194  ;;  %v862_v55 = vpack.c.bf16 %v852_v31, %v851_v32  ;;  %1567 = vmatprep.subr.bf16.mxu0 %v1853_v43  ;;  %v849_v45 = vmul.f32 %v1716_v42, %v2232_v40 }
 0x446   :  { %v1718_v23 = vpop.eup %1717 }
 0x447   :  { %v850_v41 = vmul.f32 %v1718_v23, %v2237_v46  ;;  %1564 = vmatmul.mubr.msk.bf16.vlgmr.msra.gmra.mrb[28].mxu1 %vm680_vm3, %v862_v55  ;;  %v1148_v58 = vpop.permute.xlu0 %1147 }
 0x448   :  { %v1720_v44 = vpop.eup %1719  ;;  %1574 = vmatpush3.bf16.msra.mxu1 %v1195_v48  ;;  %1575 = vmatprep.mubr.msk.bf16.mxu1 %vm1854_vm1, %v1853_v43 }
 0x449   :  { %v861_v26 = vpack.c.bf16 %v850_v41, %v849_v45  ;;  %v855_v51 = vmul.f32 %v1720_v44, %v2241_v50 }
 0x44a   :  { %v1722_v63 = vpop.eup %1721 }
 0x44b   :  { %v856_v54 = vmul.f32 %v1722_v63, %v2245_v53  ;;  %1558 = vmatmul.mubr.msk.bf16.vlgmr.msra.gmra.mrb[28].mxu0 %vm680_vm3, %v861_v26 }
 0x44c   :  { %v1724_v60 = vpop.eup %1723  ;;  %1568 = vmatpush3.bf16.msra.mxu0 %v1148_v58  ;;  %1569 = vmatprep.mubr.msk.bf16.mxu0 %vm1854_vm1, %v1853_v43 }
 0x44d   :  { %v864_v40 = vpack.c.bf16 %v856_v54, %v855_v51  ;;  %v853_v61 = vmul.f32 %v1724_v60, %v2249_v56  ;;  %1579 = vmatprep.subr.bf16.mxu0 %v1318_v25  ;;  %v1426_v54 = vld [vmem:[%s2341_s5] ss:$0 sm:$0xff]  ;;  %s1815_s5 = scalar_lea.vmem %s1392_s8, 512 }
 0x44e   :  { %v1726_v46 = vpop.eup %1725  ;;  %p1816_p4 = scmp.ne.s32.totalorder %s1392_s8, %s1815_s5  ;;  %p1821_p6 = scmp.lt.s32.totalorder %s1815_s5, %s1815_s5 }
 0x44f   :  { %v854_v0 = vmul.f32 %v1726_v46, %v2253_v59  ;;  %1576 = vmatmul.mubr.msk.bf16.vlgmr.msra.gmra.mrb[32].mxu1 %vm680_vm3, %v864_v40 }
 0x450   :  { %p1822_p7 = por %p1821_p6, %p1820_p5 }
 0x451   :  { %v863_v2 = vpack.c.bf16 %v854_v0, %v853_v61 }
 0x452   :  { %p1823_p8 = pnand %p1822_p7, %p1816_p4 }
 0x453   :  { %1570 = vmatmul.mubr.msk.bf16.vlgmr.msra.gmra.mrb[32].mxu0 %vm680_vm3, %v863_v2 }
 0x454   :  { %1580 = vmatpush3.bf16.msra.mxu0 %v1318_v25 }
 0x455   :  { %1581 = vmatprep.subr.bf16.mxu0 %v1319_v28 }
 0x458   :  { %1582 = vmatpush3.bf16.msra.mxu0 %v1319_v28 }
 0x4c3   :  { %v905_v50 = vpop.f32.mrb[20].mxu0 }
 0x4c4   :  { %1241 = vst.msk [vmem:[#allocation2] sm:$0xff] %vm282_vm2, %v905_v50  ;;  %v1535_v53 = vpop.f32.mrb[21].mxu0 }
 0x4c5   :  { %v908_v5 = vpop.f32.mrb[22].mxu0 }
 0x4c6   :  { %1242 = vst.msk [vmem:[#allocation2 + $0x8] sm:$0xff] %vm282_vm2, %v908_v5  ;;  %v1536_v6 = vpop.f32.mrb[23].mxu0 }
 0x4c7   :  { %v952_v43 = vpop.f32.mrb[20].mxu1 }
 0x4c8   :  { %1243 = vst.msk [vmem:[#allocation2 + $0x10] sm:$0xff] %vm282_vm2, %v952_v43  ;;  %v1541_v9 = vpop.f32.mrb[21].mxu1 }
 0x4c9   :  { %v955_v56 = vpop.f32.mrb[22].mxu1 }
 0x4ca   :  { %1244 = vst.msk [vmem:[#allocation2 + $0x18] sm:$0xff] %vm282_vm2, %v955_v56  ;;  %v1542_v59 = vpop.f32.mrb[23].mxu1 }
 0x512   :  { %v1046_v10 = vpop.f32.mrb[24].mxu1 }
 0x513   :  { %1253 = vrot.lane.b32.xlu0 %v1046_v10, %s1848_s10  ;;  %v1553_v12 = vpop.f32.mrb[25].mxu1 }
 0x514   :  { %v1049_v13 = vpop.f32.mrb[26].mxu1 }
 0x515   :  { %1255 = vrot.lane.b32.xlu1 %v1049_v13, %s1848_s10  ;;  %v1554_v15 = vpop.f32.mrb[27].mxu1 }
 0x516   :  { %v999_v7 = vpop.f32.mrb[24].mxu0 }
 0x517   :  { %v1547_v3 = vpop.f32.mrb[25].mxu0  ;;  %1249 = vrot.lane.b32.xlu0 %v999_v7, %s1848_s10 }
 0x518   :  { %v1002_v4 = vpop.f32.mrb[26].mxu0 }
 0x519   :  { %v1548_v16 = vpop.f32.mrb[27].mxu0  ;;  %1251 = vrot.lane.b32.xlu1 %v1002_v4, %s1848_s10 }
 0x51a   :  { %v1140_v8 = vpop.f32.mrb[28].mxu1 }
 0x51b   :  { %1274 = vrot.lane.b32.xlu0 %v1140_v8, %s1858_s27  ;;  %v1565_v18 = vpop.f32.mrb[29].mxu1 }
 0x51c   :  { %v1143_v19 = vpop.f32.mrb[30].mxu1 }
 0x51d   :  { %1276 = vrot.lane.b32.xlu1 %v1143_v19, %s1858_s27  ;;  %v1566_v62 = vpop.f32.mrb[31].mxu1 }
 0x51e   :  { %v1093_v57 = vpop.f32.mrb[28].mxu0 }
 0x51f   :  { %v1559_v49 = vpop.f32.mrb[29].mxu0  ;;  %1270 = vrot.lane.b32.xlu0 %v1093_v57, %s1858_s27 }
 0x520   :  { %v1096_v47 = vpop.f32.mrb[30].mxu0 }
 0x521   :  { %v1560_v24 = vpop.f32.mrb[31].mxu0  ;;  %1272 = vrot.lane.b32.xlu1 %v1096_v47, %s1858_s27 }
 0x522   :  { %v1234_v20 = vpop.f32.mrb[32].mxu1 }
 0x523   :  { %v1577_v30 = vpop.f32.mrb[33].mxu1 }
 0x524   :  { %v1237_v11 = vpop.f32.mrb[34].mxu1 }
 0x525   :  { %v1578_v33 = vpop.f32.mrb[35].mxu1 }
 0x526   :  { %v1187_v14 = vpop.f32.mrb[32].mxu0 }
 0x527   :  { %v1571_v34 = vpop.f32.mrb[33].mxu0  ;;  %1291 = vrot.lane.b32.xlu0 %v1187_v14, %s1859_s28 }
 0x528   :  { %v1190_v35 = vpop.f32.mrb[34].mxu0 }
 0x529   :  { %v1572_v29 = vpop.f32.mrb[35].mxu0  ;;  %1293 = vrot.lane.b32.xlu1 %v1190_v35, %s1859_s28 }
 0x52b   :  { %1295 = vrot.lane.b32.xlu0 %v1234_v20, %s1859_s28 }
 0x52d   :  { %1297 = vrot.lane.b32.xlu1 %v1237_v11, %s1859_s28 }
 0x585   :  { %v1254_v37 = vpop.permute.xlu0 %1253 }
 0x586   :  { %1264 = vst.msk [vmem:[#allocation2 + $0x10] sm:$0xff] %vm1261_vm4, %v1254_v37 }
 0x587   :  { %v1256_v38 = vpop.permute.xlu1 %1255 }
 0x588   :  { %1265 = vst.msk [vmem:[#allocation2 + $0x18] sm:$0xff] %vm1261_vm4, %v1256_v38 }
 0x589   :  { %v1250_v22 = vpop.permute.xlu0 %1249 }
 0x58a   :  { %1262 = vst.msk [vmem:[#allocation2] sm:$0xff] %vm1261_vm4, %v1250_v22 }
 0x58b   :  { %v1252_v27 = vpop.permute.xlu1 %1251 }
 0x58c   :  { %1263 = vst.msk [vmem:[#allocation2 + $0x8] sm:$0xff] %vm1261_vm4, %v1252_v27 }
 0x58d   :  { %v1275_v39 = vpop.permute.xlu0 %1274 }
 0x58e   :  { %1285 = vst.msk [vmem:[#allocation2 + $0x10] sm:$0xff] %vm1282_vm5, %v1275_v39 }
 0x58f   :  { %v1277_v32 = vpop.permute.xlu1 %1276 }
 0x590   :  { %1286 = vst.msk [vmem:[#allocation2 + $0x18] sm:$0xff] %vm1282_vm5, %v1277_v32 }
 0x591   :  { %v1271_v31 = vpop.permute.xlu0 %1270 }
 0x592   :  { %1283 = vst.msk [vmem:[#allocation2] sm:$0xff] %vm1282_vm5, %v1271_v31 }
 0x593   :  { %v1273_v36 = vpop.permute.xlu1 %1272 }
 0x594   :  { %1284 = vst.msk [vmem:[#allocation2 + $0x8] sm:$0xff] %vm1282_vm5, %v1273_v36 }
 0x599   :  { %v1292_v42 = vpop.permute.xlu0 %1291 }
 0x59a   :  { %1304 = vst.msk [vmem:[#allocation2] sm:$0xff] %vm1303_vm6, %v1292_v42 }
 0x59b   :  { %v1294_v48 = vpop.permute.xlu1 %1293 }
 0x59c   :  { %1305 = vst.msk [vmem:[#allocation2 + $0x8] sm:$0xff] %vm1303_vm6, %v1294_v48 }
 0x59d   :  { %v1296_v55 = vpop.permute.xlu0 %1295 }
 0x59e   :  { %1306 = vst.msk [vmem:[#allocation2 + $0x10] sm:$0xff] %vm1303_vm6, %v1296_v55 }
 0x59f   :  { %v1298_v23 = vpop.permute.xlu1 %1297 }
 0x5a0   :  { %1307 = vst.msk [vmem:[#allocation2 + $0x18] sm:$0xff] %vm1303_vm6, %v1298_v23 }
 0x5a1   :  { %v1308_v45 = vld [vmem:[#allocation2] sm:$0xff] }
 0x5a3   :  { %v1309_v41 = vld [vmem:[#allocation2 + $0x8] sm:$0xff] }
 0x5a4   :  { %v1312_v44 = vpack.c.bf16 %v1309_v41, %v1308_v45 }
 0x5a5   :  { %v1310_v26 = vld [vmem:[#allocation2 + $0x10] sm:$0xff] }
 0x5a6   :  { %1583 = vmatprep.mubr.msk.bf16.mxu0 %vm105_vm0, %v1312_v44 }
 0x5a7   :  { %v1311_v63 = vld [vmem:[#allocation2 + $0x18] sm:$0xff] }
 0x5a8   :  { %v1313_v51 = vpack.c.bf16 %v1311_v63, %v1310_v26 }
 0x5aa   :  { %1584 = vmatmul.mubr.msk.bf16.vlgmr.msra.gmra.mrb[36].mxu0 %vm105_vm0, %v1313_v51 }
 0x67d   :  { %v1585_v58 = vpop.f32.mrb[36].mxu0 }
 0x67e   :  { %v1376_v60 = vadd.f32 %v1585_v58, %v1426_v54  ;;  %v1367_v40 = vpop.f32.mrb[37].mxu0 }
 0x67f   :  { %v1368_v46 = vadd.f32 %v1426_v54, %v1367_v40  ;;  %v1586_v61 = vpop.f32.mrb[38].mxu0 }
 0x680   :  { %1384 = vst.msk [vmem:[#allocation11 + $0x10] sm:$0xff] %vm105_vm0, %v1376_v60  ;;  %v1379_v0 = vadd.f32 %v1586_v61, %v1426_v54  ;;  %v1370_v2 = vpop.f32.mrb[39].mxu0 }
 0x681   :  { %1382 = vst.msk [vmem:[#allocation11] sm:$0xff] %vm105_vm0, %v1368_v46  ;;  %v1371_v50 = vadd.f32 %v1426_v54, %v1370_v2 }
 0x682   :  { %1385 = vst.msk [vmem:[#allocation11 + $0x18] sm:$0xff] %vm105_vm0, %v1379_v0 }
 0x683   :  { %1383 = vst.msk [vmem:[#allocation11 + $0x8] sm:$0xff] %vm105_vm0, %v1371_v50 }
 0x684   :  { %1826 = shalt.err (!%p1823_p8)
}
 0x685   :  { %s1827_s24 = scalar_lea.hbm %s2342_s6, 512 }
 0x686   :  { %p1828_p9 = scmp.ne.s32.totalorder %s2342_s6, %s1827_s24  ;;  %p1831_p10 = scmp.lt.u32.totalorder %s1827_s24, %s2342_s6 }
 0x688   :  { %p1833_p11 = pnand %p1831_p10, %p1828_p9 }
 0x68a   :  { %1836 = shalt.err (!%p1833_p11)
}
 0x68b   :  { %1397 = dma.vmem_to_hbm [thread:$0]  %s1392_s8, 512, %s2342_s6, [#allocation5], %s1847_s9, %s1847_s9, %s1848_s10  }
 0x68c   :  { %1843 = dma.done.wait [#allocation5], 512  }
 0x68d   :  { %1844 = vsyncadd [#allocation5], 4294966784 }
 0x68e   :  { %1401 = vsyncpa [#allocation4], 1 }
 0x68f   :  { %1402 = vsyncpa [#allocation7], 1 }
 0x690   :  { %1403 = vsyncpa [#allocation10], 1 }
 0x691   :  { %1404 = vsyncpa [#allocation5], 1 }

</bundles_post_ra>
